<compile_context>
chip_gen: v5e
topology: v5e:2x2
jax: 0.10.0
libtpu: 0.0.40
codegen_flags: <defaults>
</compile_context>

<pallas_src>
import jax
import jax.numpy as jnp
from jax.experimental import pallas as pl
from jax.experimental.pallas import tpu as pltpu


_SQRT_2_OVER_PI = 0.7978845608028654
_GELU_K1 = _SQRT_2_OVER_PI * 0.044715  # c0 * 0.044715 folded into one constant


def _mlp_kernel(x_ref, w1_ref, b1_ref, w2_ref, b2_ref, o_ref, acc_ref):
    """Grid: (rows, hidden-slices). Axis 1 is a reduction over H tiles."""
    k = pl.program_id(1)

    @pl.when(k == 0)
    def _init():
        acc_ref[...] = jnp.zeros_like(acc_ref)

    # First matmul on this hidden slice: (tm, C) @ (C, th) -> (tm, th), f32 acc.
    # b1 slice added here is applied exactly once per hidden column.
    h = jnp.dot(x_ref[...], w1_ref[...],
                preferred_element_type=jnp.float32) + b1_ref[...]

    # tanh-approx GELU, lean form:
    #   u = h * (c0 + (c0*0.044715) * h*h);  g = 0.5*h*(1 + tanh(u))
    h2 = h * h
    u = h * (_SQRT_2_OVER_PI + _GELU_K1 * h2)
    g = 0.5 * h * (1.0 + jnp.tanh(u))

    # Second matmul, accumulated over hidden-dim tiles (bf16 in, f32 acc).
    acc_ref[...] += jnp.dot(g.astype(w2_ref.dtype), w2_ref[...],
                            preferred_element_type=jnp.float32)

    @pl.when(k == pl.num_programs(1) - 1)
    def _finalize():
        o_ref[...] = (acc_ref[...] + b2_ref[...]).astype(o_ref.dtype)


def _largest_tile(dim, cap, align=128):
    """Largest multiple of `align` that divides `dim` and is <= cap."""
    if dim <= cap:
        return dim
    best = align
    t = align
    while t <= cap:
        if dim % t == 0:
            best = t
        t += align
    return best


def mlp_forward(x, w1, b1, w2, b2, *, tm=256, th=None,
                compute_dtype=jnp.bfloat16):
    """x: (B, T, C). w1: (C, 4C), b1: (4C,), w2: (4C, C), b2: (C,).

    Weights are stored (in_features, out_features); semantics match
    nn.Linear after transposing PyTorch's (out, in) weight.
    """
    B, T, C = x.shape
    Cin, H = w1.shape
    assert Cin == C and w2.shape == (H, C) and b1.shape == (H,) and b2.shape == (C,)
    # Lane-dense constraint: embed & hidden dims must be multiples of 128 so
    # output stores are full (unmasked) vst and blocks satisfy (8,128) tiling.
    assert C % 128 == 0 and H % 128 == 0, \
        "n_embd and 4*n_embd must be multiples of 128 for this kernel"

    M = B * T
    # Row tile: multiple of 8, no larger than the (padded) row count.
    tm = min(tm, max(8, ((M + 7) // 8) * 8))
    tm = ((tm + 7) // 8) * 8
    M_pad = ((M + tm - 1) // tm) * tm

    # Hidden-dim tile (reduction axis for the second matmul).
    if th is None:
        th = _largest_tile(H, 2048)
    assert H % th == 0 and th % 128 == 0

    x2 = x.reshape(M, C)
    if M_pad != M:
        x2 = jnp.pad(x2, ((0, M_pad - M), (0, 0)))

    # bf16 matmul inputs; biases and accumulation stay f32.
    x2c = x2.astype(compute_dtype)
    w1c = w1.astype(compute_dtype)
    w2c = w2.astype(compute_dtype)
    b1_2 = b1.reshape(1, H).astype(jnp.float32)
    b2_2 = b2.reshape(1, C).astype(jnp.float32)

    grid = (M_pad // tm, H // th)

    cbytes = jnp.dtype(compute_dtype).itemsize
    obytes = jnp.dtype(x.dtype).itemsize
    # Double-buffered input/output blocks + f32 accumulator scratch, with headroom.
    vmem_bytes = 2 * (tm * C * cbytes        # x block
                      + C * th * cbytes      # w1 slice
                      + th * C * cbytes      # w2 slice
                      + th * 4 + C * 4       # bias slices (f32)
                      + tm * C * obytes)     # output block
    vmem_bytes += tm * C * 4                 # accumulator
    vmem_limit = int(min(max(2 * vmem_bytes, 32 << 20), 100 << 20))

    cost = pl.CostEstimate(
        flops=4 * M * C * H,                 # two (M,C,H) matmuls
        transcendentals=M * H,               # one tanh per hidden activation
        bytes_accessed=(x2c.size * cbytes + w1c.size * cbytes
                        + w2c.size * cbytes + (H + C) * 4
                        + M_pad * C * obytes),
    )

    out2 = pl.pallas_call(
        _mlp_kernel,
        out_shape=jax.ShapeDtypeStruct((M_pad, C), x.dtype),
        grid_spec=pltpu.PrefetchScalarGridSpec(
            num_scalar_prefetch=0,
            grid=grid,
            in_specs=[
                pl.BlockSpec((tm, C), lambda i, k: (i, 0)),   # x rows
                pl.BlockSpec((C, th), lambda i, k: (0, k)),   # c_fc weight slice
                pl.BlockSpec((1, th), lambda i, k: (0, k)),   # c_fc bias slice
                pl.BlockSpec((th, C), lambda i, k: (k, 0)),   # c_proj weight slice
                pl.BlockSpec((1, C), lambda i, k: (0, 0)),    # c_proj bias
            ],
            out_specs=pl.BlockSpec((tm, C), lambda i, k: (i, 0)),
            scratch_shapes=[pltpu.VMEM((tm, C), jnp.float32)],
        ),
        compiler_params=pltpu.CompilerParams(
            dimension_semantics=("parallel", "arbitrary"),
            vmem_limit_bytes=vmem_limit,
        ),
        cost_estimate=cost,
    )(x2c, w1c, b1_2, w2c, b2_2)

    return out2[:M].reshape(B, T, C)


def mlp_reference(x, w1, b1, w2, b2):
    h = x @ w1 + b1
    c0 = 0.7978845608028654
    g = 0.5 * h * (1.0 + jnp.tanh(c0 * (h + 0.044715 * h ** 3)))
    return g @ w2 + b2


if __name__ == "__main__":
    # Small config with lane-dense dims: n_embd=128, hidden=512, batch=2, seq=8.
    B, T, C = 2, 8, 128
    H = 4 * C

    key = jax.random.PRNGKey(0)
    kx, kw1, kb1, kw2, kb2 = jax.random.split(key, 5)

    x = jax.random.normal(kx, (B, T, C), dtype=jnp.float32)
    # Deterministic synthetic params (PyTorch Linear shapes, stored (in, out)).
    w1 = jax.random.uniform(kw1, (C, H), minval=-1.0, maxval=1.0,
                            dtype=jnp.float32) / jnp.sqrt(C)
    b1 = jax.random.uniform(kb1, (H,), minval=-1.0, maxval=1.0,
                            dtype=jnp.float32) / jnp.sqrt(C)
    w2 = jax.random.uniform(kw2, (H, C), minval=-1.0, maxval=1.0,
                            dtype=jnp.float32) / jnp.sqrt(H)
    b2 = jax.random.uniform(kb2, (C,), minval=-1.0, maxval=1.0,
                            dtype=jnp.float32) / jnp.sqrt(H)

    out = mlp_forward(x, w1, b1, w2, b2)
    out = jax.block_until_ready(out)

    ref = mlp_reference(x, w1, b1, w2, b2)
    assert out.shape == (B, T, C)
    # bf16 matmul inputs with f32 accumulation -> loosened tolerance vs f32 ref.
    assert jnp.all(jnp.isfinite(out)), "non-finite output"
    assert jnp.allclose(out, ref, atol=3e-2, rtol=3e-2), "mismatch vs reference"

    print("KERNEL_OK")
</pallas_src>

<mosaic_0001>
module attributes {stable_mosaic.version = 11 : i64} {
  func.func @_mlp_kernel(%arg0: i32, %arg1: i32, %arg2: memref<16x128xbf16, #tpu.memory_space<vmem>>, %arg3: memref<128x512xbf16, #tpu.memory_space<vmem>>, %arg4: memref<1x512xf32, #tpu.memory_space<vmem>>, %arg5: memref<512x128xbf16, #tpu.memory_space<vmem>>, %arg6: memref<1x128xf32, #tpu.memory_space<vmem>>, %arg7: memref<16x128xf32, #tpu.memory_space<vmem>>, %arg8: memref<16x128xf32, #tpu.memory_space<vmem>>) attributes {dimension_semantics = [#tpu.dimension_semantics<parallel>, #tpu.dimension_semantics<arbitrary>], iteration_bounds = array<i64: 1, 1>, scalar_prefetch = 0 : i64, scratch_operands = 1 : i64, tpu.core_type = #tpu.core_type<tc>, window_params = [{transform_indices = @transform_0, window_bounds = array<i64: 16, 128>}, {transform_indices = @transform_1, window_bounds = array<i64: 128, 512>}, {transform_indices = @transform_2, window_bounds = array<i64: 1, 512>}, {transform_indices = @transform_3, window_bounds = array<i64: 512, 128>}, {pipeline_mode = #tpu.pipeline_mode<synchronous>, transform_indices = @transform_4, window_bounds = array<i64: 1, 128>}, {transform_indices = @transform_5, window_bounds = array<i64: 16, 128>}]} {
    %c0_i32 = arith.constant 0 : i32
    %0 = arith.cmpi eq, %arg1, %c0_i32 : i32
    %1 = arith.extui %0 : i1 to i32
    %c0_i32_0 = arith.constant 0 : i32
    %2 = arith.cmpi ne, %1, %c0_i32_0 : i32
    scf.if %2 {
      %cst_19 = arith.constant 0.000000e+00 : f32
      %30 = vector.broadcast %cst_19 : f32 to vector<16x128xf32>
      %c0_20 = arith.constant 0 : index
      %c0_21 = arith.constant 0 : index
      %31 = vector.load %arg8[%c0_20, %c0_21] : memref<16x128xf32, #tpu.memory_space<vmem>>, vector<16x128xf32>
      tpu.vector_store %arg8[%c0_20, %c0_21], %30 {strides = array<i32>} : memref<16x128xf32, #tpu.memory_space<vmem>>, vector<16x128xf32>,
    } else {
    }
    %c0 = arith.constant 0 : index
    %c0_1 = arith.constant 0 : index
    %3 = vector.load %arg2[%c0, %c0_1] : memref<16x128xbf16, #tpu.memory_space<vmem>>, vector<16x128xbf16>
    %c0_2 = arith.constant 0 : index
    %c0_3 = arith.constant 0 : index
    %4 = vector.load %arg3[%c0_2, %c0_3] : memref<128x512xbf16, #tpu.memory_space<vmem>>, vector<128x512xbf16>
    %cst = arith.constant dense<0.000000e+00> : vector<16x512xf32>
    %5 = tpu.matmul %3, %4, %cst {dimension_numbers = #tpu.dot_dimension_numbers<[1], [0], [0], [1], [0, 0, 1, 1], [], []>} : vector<16x128xbf16>, vector<128x512xbf16>, vector<16x512xf32> -> vector<16x512xf32>
    %c0_4 = arith.constant 0 : index
    %c0_5 = arith.constant 0 : index
    %6 = vector.load %arg4[%c0_4, %c0_5] : memref<1x512xf32, #tpu.memory_space<vmem>>, vector<1x512xf32>
    %7 = vector.broadcast %6 : vector<1x512xf32> to vector<16x512xf32>
    %8 = arith.addf %5, %7 : vector<16x512xf32>
    %9 = arith.mulf %8, %8 : vector<16x512xf32>
    %cst_6 = arith.constant 0.0356774069 : f32
    %10 = vector.broadcast %cst_6 : f32 to vector<16x512xf32>
    %11 = arith.mulf %10, %9 : vector<16x512xf32>
    %cst_7 = arith.constant 0.797884583 : f32
    %12 = vector.broadcast %cst_7 : f32 to vector<16x512xf32>
    %13 = arith.addf %12, %11 : vector<16x512xf32>
    %14 = arith.mulf %8, %13 : vector<16x512xf32>
    %cst_8 = arith.constant 5.000000e-01 : f32
    %15 = vector.broadcast %cst_8 : f32 to vector<16x512xf32>
    %16 = arith.mulf %15, %8 : vector<16x512xf32>
    %17 = math.tanh %14 : vector<16x512xf32>
    %cst_9 = arith.constant 1.000000e+00 : f32
    %18 = vector.broadcast %cst_9 : f32 to vector<16x512xf32>
    %19 = arith.addf %18, %17 : vector<16x512xf32>
    %20 = arith.mulf %16, %19 : vector<16x512xf32>
    %c0_10 = arith.constant 0 : index
    %c0_11 = arith.constant 0 : index
    %21 = vector.load %arg8[%c0_10, %c0_11] : memref<16x128xf32, #tpu.memory_space<vmem>>, vector<16x128xf32>
    %22 = arith.truncf %20 : vector<16x512xf32> to vector<16x512xbf16>
    %c0_12 = arith.constant 0 : index
    %c0_13 = arith.constant 0 : index
    %23 = vector.load %arg5[%c0_12, %c0_13] : memref<512x128xbf16, #tpu.memory_space<vmem>>, vector<512x128xbf16>
    %cst_14 = arith.constant dense<0.000000e+00> : vector<16x128xf32>
    %24 = tpu.matmul %22, %23, %cst_14 {dimension_numbers = #tpu.dot_dimension_numbers<[1], [0], [0], [1], [0, 0, 1, 1], [], []>} : vector<16x512xbf16>, vector<512x128xbf16>, vector<16x128xf32> -> vector<16x128xf32>
    %25 = arith.addf %21, %24 : vector<16x128xf32>
    %c0_15 = arith.constant 0 : index
    %c0_16 = arith.constant 0 : index
    %26 = vector.load %arg8[%c0_15, %c0_16] : memref<16x128xf32, #tpu.memory_space<vmem>>, vector<16x128xf32>
    tpu.vector_store %arg8[%c0_15, %c0_16], %25 {strides = array<i32>} : memref<16x128xf32, #tpu.memory_space<vmem>>, vector<16x128xf32>,
    %c0_i32_17 = arith.constant 0 : i32
    %27 = arith.cmpi eq, %arg1, %c0_i32_17 : i32
    %28 = arith.extui %27 : i1 to i32
    %c0_i32_18 = arith.constant 0 : i32
    %29 = arith.cmpi ne, %28, %c0_i32_18 : i32
    scf.if %29 {
      %c0_19 = arith.constant 0 : index
      %c0_20 = arith.constant 0 : index
      %30 = vector.load %arg8[%c0_19, %c0_20] : memref<16x128xf32, #tpu.memory_space<vmem>>, vector<16x128xf32>
      %c0_21 = arith.constant 0 : index
      %c0_22 = arith.constant 0 : index
      %31 = vector.load %arg6[%c0_21, %c0_22] : memref<1x128xf32, #tpu.memory_space<vmem>>, vector<1x128xf32>
      %32 = vector.broadcast %31 : vector<1x128xf32> to vector<16x128xf32>
      %33 = arith.addf %30, %32 : vector<16x128xf32>
      %c0_23 = arith.constant 0 : index
      %c0_24 = arith.constant 0 : index
      %34 = vector.load %arg7[%c0_23, %c0_24] : memref<16x128xf32, #tpu.memory_space<vmem>>, vector<16x128xf32>
      tpu.vector_store %arg7[%c0_23, %c0_24], %33 {strides = array<i32>} : memref<16x128xf32, #tpu.memory_space<vmem>>, vector<16x128xf32>,
    } else {
    }
    return
  }
  func.func @transform_0(%arg0: i32, %arg1: i32) -> (i32, i32) {
    %c0_i32 = arith.constant 0 : i32
    %c0_i32_0 = arith.constant 0 : i32
    return %arg0, %c0_i32 : i32, i32
  }
  func.func @transform_1(%arg0: i32, %arg1: i32) -> (i32, i32) {
    %c0_i32 = arith.constant 0 : i32
    %c0_i32_0 = arith.constant 0 : i32
    return %c0_i32, %arg1 : i32, i32
  }
  func.func @transform_2(%arg0: i32, %arg1: i32) -> (i32, i32) {
    %c0_i32 = arith.constant 0 : i32
    %c0_i32_0 = arith.constant 0 : i32
    return %c0_i32, %arg1 : i32, i32
  }
  func.func @transform_3(%arg0: i32, %arg1: i32) -> (i32, i32) {
    %c0_i32 = arith.constant 0 : i32
    %c0_i32_0 = arith.constant 0 : i32
    return %arg1, %c0_i32 : i32, i32
  }
  func.func @transform_4(%arg0: i32, %arg1: i32) -> (i32, i32) {
    %c0_i32 = arith.constant 0 : i32
    %c0_i32_0 = arith.constant 0 : i32
    %c0_i32_1 = arith.constant 0 : i32
    return %c0_i32, %c0_i32_0 : i32, i32
  }
  func.func @transform_5(%arg0: i32, %arg1: i32) -> (i32, i32) {
    %c0_i32 = arith.constant 0 : i32
    %c0_i32_0 = arith.constant 0 : i32
    return %arg0, %c0_i32 : i32, i32
  }
}

</mosaic_0001>

<bundles_post_ra>
// kernel: tpu_custom_call.1
= control target key start
LH: loop header
LB: loop body
LE: loop exit
PB: predicated region body
PF: predicated region fallthrough
CT: control target
= control target key end

     0   :  { %10 = vsyncpa [#allocation4], 0  ;;  %s1344_s0 = inlined_call_operand.hbm [shape: bf16[16,128], index: 0, kind: input, shape index: {}]   ;;  %s1345_s1 = inlined_call_operand.hbm [shape: bf16[128,512], index: 1, kind: input, shape index: {}]   ;;  %s1346_s2 = inlined_call_operand.hbm [shape: f32[1,512], index: 2, kind: input, shape index: {}]   ;;  %s1347_s3 = inlined_call_operand.hbm [shape: bf16[512,128], index: 3, kind: input, shape index: {}]   ;;  %s1348_s4 = inlined_call_operand.vmem [shape: f32[1,128], index: 4, kind: input, shape index: {}]   ;;  %s1349_s5 = inlined_call_operand.hbm [shape: f32[16,128], index: 5, kind: output, shape index: {}]  }
   0x1   :  { %11 = vsyncpa [#allocation7], 0 }
   0x2   :  { %12 = vsyncpa [#allocation10], 0  ;;  %s31_s20 = sshll.u32 %s1345_s1, 4  ;;  %s32_s20 = int_to_ptr.hbm [resolvable:$true] %s31_s20 }
   0x3   :  { %13 = vsyncpa [#allocation5], 0  ;;  %s1255_s21 = smov [#allocation6]   ;;  %s18_s25 = sshll.u32 %s1344_s0, 4  ;;  %s19_s25 = int_to_ptr.hbm [resolvable:$true] %s18_s25 }
   0x4   :  { %s33_s22 = sshll.u32 %s1255_s21, 4  ;;  %s1256_s26 = smov 256   ;;  %s34_s22 = int_to_ptr.vmem [resolvable:$true] %s33_s22 }
   0x5   :  { %s1257_s27 = smov 16   ;;  %s1258_s28 = smov [#allocation3]  }
   0x6   :  { %39 = dma.hbm_to_vmem [thread:$0]  %s32_s20, 4096, %s34_s22, [#allocation7], %s1256_s26, %s1256_s26, %s1257_s27  }
   0x7   :  { %s20_s29 = sshll.u32 %s1258_s28, 4  ;;  %s1259_s30 = smov 64   ;;  %s21_s29 = int_to_ptr.vmem [resolvable:$true] %s20_s29 }
   0x8   :  { %s1260_s6 = smov 4   ;;  %s45_s8 = sshll.u32 %s1346_s2, 4  ;;  %s46_s8 = int_to_ptr.hbm [resolvable:$true] %s45_s8 }
   0x9   :  { %26 = dma.hbm_to_vmem [thread:$0]  %s19_s25, 128, %s21_s29, [#allocation4], %s1259_s30, %s1259_s30, %s1260_s6  }
   0xa   :  { %s1261_s9 = smov [#allocation8]   ;;  %s55_s12 = sshll.u32 %s1347_s3, 4  ;;  %s56_s12 = int_to_ptr.hbm [resolvable:$true] %s55_s12 }
   0xb   :  { %s47_s10 = sshll.u32 %s1261_s9, 4  ;;  %s1262_s13 = smov [#allocation9]   ;;  %s48_s10 = int_to_ptr.vmem [resolvable:$true] %s47_s10 }
   0xc   :  { %50 = dma.hbm_to_vmem [thread:$0]  %s46_s8, 64, %s48_s10, [#allocation7]  }
   0xd   :  { %s57_s14 = sshll.u32 %s1262_s13, 4  ;;  %s58_s14 = int_to_ptr.vmem [resolvable:$true] %s57_s14 }
   0xe   :  { %63 = dma.hbm_to_vmem [thread:$0]  %s56_s12, 4096, %s58_s14, [#allocation10], %s1259_s30, %s1259_s30, %s1260_s6  }
   0xf   :  { %1247 = dma.done.wait [#allocation4], 128  }
  0x10   :  { %1248 = vsyncadd [#allocation4], 4294967168 }
  0x11   :  { %1249 = dma.done.wait [#allocation7], 4160  }
  0x12   :  { %1250 = vsyncadd [#allocation7], 4294963136 }
  0x13   :  { %1251 = dma.done.wait [#allocation10], 4096  }
  0x14   :  { %1252 = vsyncadd [#allocation10], 4294963200  ;;  %v892_v0 = vld [vmem:[#allocation6 + $0xe0] sm:$0xf]  ;;  %v1065_v1 = vld [vmem:[#allocation6 + $0xec] sm:$0xf0] }
  0x15   :  { %v1063_v2 = vld [vmem:[#allocation6 + $0xe4] sm:$0xf]  ;;  %v893_v3 = vor.u32 %v1065_v1, %v892_v0  ;;  %v894_v4 = vld [vmem:[#allocation6 + $0xf0] sm:$0xf0]  ;;  %v900_v5 = vld [vmem:[#allocation6 + $0xe8] sm:$0xf] }
  0x16   :  { %v1066_v6 = vld [vmem:[#allocation6 + $0xf4] sm:$0xf0]  ;;  %v897_v7 = vor.u32 %v1063_v2, %v894_v4  ;;  %v1064_v9 = vld [vmem:[#allocation6 + $0xec] sm:$0xf]  ;;  %v902_v10 = vld [vmem:[#allocation6 + $0xf8] sm:$0xf0] }
  0x17   :  { %v901_v8 = vor.u32 %v1066_v6, %v900_v5  ;;  %v876_v11 = vld [vmem:[#allocation6 + $0xc0] sm:$0xf]  ;;  %298 = vmatpush.bf16.msra.mxu0 %v893_v3  ;;  %v905_v12 = vor.u32 %v1064_v9, %v902_v10  ;;  %v1061_v13 = vld [vmem:[#allocation6 + $0xcc] sm:$0xf0]  ;;  %v1059_v14 = vld [vmem:[#allocation6 + $0xc4] sm:$0xf] }
  0x18   :  { %v878_v15 = vld [vmem:[#allocation6 + $0xd0] sm:$0xf0]  ;;  %312 = vmatpush.bf16.msra.mxu1 %v897_v7  ;;  %v877_v16 = vor.u32 %v1061_v13, %v876_v11  ;;  %v884_v18 = vld [vmem:[#allocation6 + $0xc8] sm:$0xf]  ;;  %v1062_v19 = vld [vmem:[#allocation6 + $0xd4] sm:$0xf0] }
  0x19   :  { %326 = vmatpush.bf16.msra.mxu2 %v901_v8  ;;  %v881_v17 = vor.u32 %v1059_v14, %v878_v15  ;;  %v1060_v20 = vld [vmem:[#allocation6 + $0xcc] sm:$0xf]  ;;  %340 = vmatpush.bf16.msra.mxu3 %v905_v12  ;;  %v885_v21 = vor.u32 %v1062_v19, %v884_v18  ;;  %v886_v22 = vld [vmem:[#allocation6 + $0xd8] sm:$0xf0]  ;;  %v860_v23 = vld [vmem:[#allocation6 + $0xa0] sm:$0xf] }
  0x1a   :  { %v1057_v24 = vld [vmem:[#allocation6 + $0xac] sm:$0xf0]  ;;  %v889_v25 = vor.u32 %v1060_v20, %v886_v22  ;;  %v1055_v26 = vld [vmem:[#allocation6 + $0xa4] sm:$0xf]  ;;  %v862_v27 = vld [vmem:[#allocation6 + $0xb0] sm:$0xf0] }
  0x1b   :  { %v868_v28 = vld [vmem:[#allocation6 + $0xa8] sm:$0xf]  ;;  %299 = vmatpush.bf16.msra.mxu0 %v877_v16  ;;  %v861_v29 = vor.u32 %v1057_v24, %v860_v23  ;;  %v1058_v30 = vld [vmem:[#allocation6 + $0xb4] sm:$0xf0]  ;;  %v1056_v31 = vld [vmem:[#allocation6 + $0xac] sm:$0xf]  ;;  %v865_v33 = vor.u32 %v1055_v26, %v862_v27 }
  0x1c   :  { %v870_v32 = vld [vmem:[#allocation6 + $0xb8] sm:$0xf0]  ;;  %313 = vmatpush.bf16.msra.mxu1 %v881_v17  ;;  %v869_v34 = vor.u32 %v1058_v30, %v868_v28  ;;  %v844_v35 = vld [vmem:[#allocation6 + $0x80] sm:$0xf]  ;;  %v1053_v36 = vld [vmem:[#allocation6 + $0x8c] sm:$0xf0] }
  0x1d   :  { %327 = vmatpush.bf16.msra.mxu2 %v885_v21  ;;  %v1051_v37 = vld [vmem:[#allocation6 + $0x84] sm:$0xf]  ;;  %341 = vmatpush.bf16.msra.mxu3 %v889_v25  ;;  %v873_v38 = vor.u32 %v1056_v31, %v870_v32  ;;  %v846_v39 = vld [vmem:[#allocation6 + $0x90] sm:$0xf0]  ;;  %v852_v40 = vld [vmem:[#allocation6 + $0x88] sm:$0xf]  ;;  %v845_v44 = vor.u32 %v1053_v36, %v844_v35 }
  0x1e   :  { %v1054_v41 = vld [vmem:[#allocation6 + $0x94] sm:$0xf0]  ;;  %v1052_v42 = vld [vmem:[#allocation6 + $0x8c] sm:$0xf]  ;;  %v854_v43 = vld [vmem:[#allocation6 + $0x98] sm:$0xf0]  ;;  %v849_v45 = vor.u32 %v1051_v37, %v846_v39 }
  0x1f   :  { %300 = vmatpush.bf16.msra.mxu0 %v861_v29  ;;  %v853_v46 = vor.u32 %v1054_v41, %v852_v40  ;;  %v828_v47 = vld [vmem:[#allocation6 + $0x60] sm:$0xf]  ;;  %v1049_v48 = vld [vmem:[#allocation6 + $0x6c] sm:$0xf0]  ;;  %v1047_v49 = vld [vmem:[#allocation6 + $0x64] sm:$0xf]  ;;  %v857_v50 = vor.u32 %v1052_v42, %v854_v43 }
  0x20   :  { %314 = vmatpush.bf16.msra.mxu1 %v865_v33  ;;  %v830_v51 = vld [vmem:[#allocation6 + $0x70] sm:$0xf0]  ;;  %v836_v52 = vld [vmem:[#allocation6 + $0x68] sm:$0xf]  ;;  %v1050_v53 = vld [vmem:[#allocation6 + $0x74] sm:$0xf0]  ;;  %v829_v56 = vor.u32 %v1049_v48, %v828_v47 }
  0x21   :  { %328 = vmatpush.bf16.msra.mxu2 %v869_v34  ;;  %342 = vmatpush.bf16.msra.mxu3 %v873_v38  ;;  %v1048_v54 = vld [vmem:[#allocation6 + $0x6c] sm:$0xf]  ;;  %v838_v55 = vld [vmem:[#allocation6 + $0x78] sm:$0xf0]  ;;  %v833_v57 = vor.u32 %v1047_v49, %v830_v51  ;;  %v837_v58 = vor.u32 %v1050_v53, %v836_v52  ;;  %v812_v59 = vld [vmem:[#allocation6 + $0x40] sm:$0xf] }
  0x22   :  { %v1045_v60 = vld [vmem:[#allocation6 + $0x4c] sm:$0xf0]  ;;  %v1043_v61 = vld [vmem:[#allocation6 + $0x44] sm:$0xf]  ;;  %v841_v62 = vor.u32 %v1048_v54, %v838_v55  ;;  %v814_v63 = vld [vmem:[#allocation6 + $0x50] sm:$0xf0] }
  0x23   :  { %301 = vmatpush.bf16.msra.mxu0 %v845_v44  ;;  %v820_v0 = vld [vmem:[#allocation6 + $0x48] sm:$0xf]  ;;  %v1046_v1 = vld [vmem:[#allocation6 + $0x54] sm:$0xf0]  ;;  %v1044_v2 = vld [vmem:[#allocation6 + $0x4c] sm:$0xf]  ;;  %v813_v4 = vor.u32 %v1045_v60, %v812_v59  ;;  %v817_v5 = vor.u32 %v1043_v61, %v814_v63 }
  0x24   :  { %315 = vmatpush.bf16.msra.mxu1 %v849_v45  ;;  %v822_v3 = vld [vmem:[#allocation6 + $0x58] sm:$0xf0]  ;;  %v821_v6 = vor.u32 %v1046_v1, %v820_v0  ;;  %v796_v7 = vld [vmem:[#allocation6 + $0x20] sm:$0xf]  ;;  %v1041_v8 = vld [vmem:[#allocation6 + $0x2c] sm:$0xf0] }
  0x25   :  { %329 = vmatpush.bf16.msra.mxu2 %v853_v46  ;;  %343 = vmatpush.bf16.msra.mxu3 %v857_v50  ;;  %v1039_v9 = vld [vmem:[#allocation6 + $0x24] sm:$0xf]  ;;  %v825_v10 = vor.u32 %v1044_v2, %v822_v3  ;;  %v798_v11 = vld [vmem:[#allocation6 + $0x30] sm:$0xf0]  ;;  %v804_v12 = vld [vmem:[#allocation6 + $0x28] sm:$0xf]  ;;  %v797_v16 = vor.u32 %v1041_v8, %v796_v7 }
  0x26   :  { %v1042_v13 = vld [vmem:[#allocation6 + $0x34] sm:$0xf0]  ;;  %v1040_v14 = vld [vmem:[#allocation6 + $0x2c] sm:$0xf]  ;;  %v806_v15 = vld [vmem:[#allocation6 + $0x38] sm:$0xf0]  ;;  %v801_v17 = vor.u32 %v1039_v9, %v798_v11 }
  0x27   :  { %302 = vmatpush.bf16.msra.mxu0 %v829_v56  ;;  %v805_v18 = vor.u32 %v1042_v13, %v804_v12  ;;  %v780_v19 = vld [vmem:[#allocation6] sm:$0xf]  ;;  %v1037_v20 = vld [vmem:[#allocation6 + $0xc] sm:$0xf0]  ;;  %v1035_v21 = vld [vmem:[#allocation6 + $0x4] sm:$0xf]  ;;  %v809_v22 = vor.u32 %v1040_v14, %v806_v15 }
  0x28   :  { %316 = vmatpush.bf16.msra.mxu1 %v833_v57  ;;  %v782_v23 = vld [vmem:[#allocation6 + $0x10] sm:$0xf0]  ;;  %v788_v24 = vld [vmem:[#allocation6 + $0x8] sm:$0xf]  ;;  %v1038_v25 = vld [vmem:[#allocation6 + $0x14] sm:$0xf0]  ;;  %v781_v28 = vor.u32 %v1037_v20, %v780_v19 }
  0x29   :  { %330 = vmatpush.bf16.msra.mxu2 %v837_v58  ;;  %344 = vmatpush.bf16.msra.mxu3 %v841_v62  ;;  %v1036_v26 = vld [vmem:[#allocation6 + $0xc] sm:$0xf]  ;;  %v790_v27 = vld [vmem:[#allocation6 + $0x18] sm:$0xf0]  ;;  %v785_v29 = vor.u32 %v1035_v21, %v782_v23  ;;  %v789_v30 = vor.u32 %v1038_v25, %v788_v24  ;;  %v1073_v35 = vld [vmem:[#allocation9 + $0x30] sm:$0xff]  ;;  %s1263_s15 = smov [#allocation11]  }
  0x2a   :  { %v793_v31 = vor.u32 %v1036_v26, %v790_v27  ;;  %v1034_v32 = vld [vmem:[#allocation3] sm:$0xff]  ;;  %v1072_v39 = vld [vmem:[#allocation9 + $0x28] sm:$0xff]  ;;  %v1071_v43 = vld [vmem:[#allocation9 + $0x20] sm:$0xff]  ;;  %s757_s16 = sshll.u32 %s1263_s15, 4  ;;  %s759_s19 = sshll.u32 %s1349_s5, 4  ;;  %s758_s16 = int_to_ptr.vmem [resolvable:$true] %s757_s16  ;;  %s760_s19 = int_to_ptr.hbm [resolvable:$true] %s759_s19 }
  0x2b   :  { %303 = vmatpush.bf16.msra.mxu0 %v813_v4  ;;  %v1074_v33 = vld [vmem:[#allocation9 + $0x38] sm:$0xff]  ;;  %v1081_v36 = vld [vmem:[#allocation9 + $0x70] sm:$0xff]  ;;  %v1080_v40 = vld [vmem:[#allocation9 + $0x68] sm:$0xff]  ;;  %s1265_s20 = smov 8  }
  0x2c   :  { %317 = vmatpush.bf16.msra.mxu1 %v817_v5  ;;  %v1082_v34 = vld [vmem:[#allocation9 + $0x78] sm:$0xff]  ;;  %v1089_v41 = vld [vmem:[#allocation9 + $0xb0] sm:$0xff]  ;;  %v1079_v44 = vld [vmem:[#allocation9 + $0x60] sm:$0xff] }
  0x2d   :  { %331 = vmatpush.bf16.msra.mxu2 %v821_v6  ;;  %345 = vmatpush.bf16.msra.mxu3 %v825_v10  ;;  %v1090_v37 = vld [vmem:[#allocation9 + $0xb8] sm:$0xff]  ;;  %v1097_v42 = vld [vmem:[#allocation9 + $0xf0] sm:$0xff]  ;;  %v1088_v45 = vld [vmem:[#allocation9 + $0xa8] sm:$0xff] }
  0x2e   :  { %v1098_v38 = vld [vmem:[#allocation9 + $0xf8] sm:$0xff]  ;;  %v1096_v46 = vld [vmem:[#allocation9 + $0xe8] sm:$0xff]  ;;  %v1087_v49 = vld [vmem:[#allocation9 + $0xa0] sm:$0xff] }
  0x2f   :  { %304 = vmatpush.bf16.msra.mxu0 %v797_v16  ;;  %v1070_v47 = vld [vmem:[#allocation9 + $0x18] sm:$0xff]  ;;  %v1095_v50 = vld [vmem:[#allocation9 + $0xe0] sm:$0xff]  ;;  %v1069_v51 = vld [vmem:[#allocation9 + $0x10] sm:$0xff] }
  0x30   :  { %318 = vmatpush.bf16.msra.mxu1 %v801_v17  ;;  %v1078_v48 = vld [vmem:[#allocation9 + $0x58] sm:$0xff]  ;;  %v1077_v52 = vld [vmem:[#allocation9 + $0x50] sm:$0xff]  ;;  %v1068_v56 = vld [vmem:[#allocation9 + $0x8] sm:$0xff] }
  0x31   :  { %332 = vmatpush.bf16.msra.mxu2 %v805_v18  ;;  %346 = vmatpush.bf16.msra.mxu3 %v809_v22  ;;  %v1086_v53 = vld [vmem:[#allocation9 + $0x98] sm:$0xff]  ;;  %v1076_v57 = vld [vmem:[#allocation9 + $0x48] sm:$0xff]  ;;  %v1085_v58 = vld [vmem:[#allocation9 + $0x90] sm:$0xff] }
  0x32   :  { %v1094_v54 = vld [vmem:[#allocation9 + $0xd8] sm:$0xff]  ;;  %v1093_v59 = vld [vmem:[#allocation9 + $0xd0] sm:$0xff]  ;;  %v1067_v62 = vld [vmem:[#allocation9] sm:$0xff] }
  0x33   :  { %305 = vmatpush.bf16.msra.mxu0 %v781_v28  ;;  %v1308_v55 = vld [vmem:[#allocation8] sm:$0xf]  ;;  %v1075_v63 = vld [vmem:[#allocation9 + $0x40] sm:$0xff]  ;;  %v1084_v1 = vld [vmem:[#allocation9 + $0x88] sm:$0xff] }
  0x34   :  { %319 = vmatpush.bf16.msra.mxu1 %v785_v29  ;;  %v124_v60 = vperm.slane %v1308_v55, 0  ;;  %v125_v61 = vperm.slane %v1308_v55, 1  ;;  %v1092_v2 = vld [vmem:[#allocation9 + $0xc8] sm:$0xff]  ;;  %v1083_v6 = vld [vmem:[#allocation9 + $0x80] sm:$0xff]  ;;  %v126_v10 = vperm.slane %v1308_v55, 2  ;;  %v127_v12 = vperm.slane %v1308_v55, 3 }
  0x35   :  { %333 = vmatpush.bf16.msra.mxu2 %v789_v30  ;;  %347 = vmatpush.bf16.msra.mxu3 %v793_v31  ;;  %v1091_v7 = vld [vmem:[#allocation9 + $0xc0] sm:$0xff] }
  0x36   :  { %306 = vmatmul.bf16.vlgmr.msra.gmra.mxu0 %v1034_v32 }
  0x37   :  { %320 = vmatmul.bf16.vlgmr.msra.gmra.mxu1 %v1034_v32  ;;  %680 = vmatpush.bf16.msrb.mxu0 %v1074_v33 }
  0x38   :  { %334 = vmatmul.bf16.vlgmr.msra.gmra.mxu2 %v1034_v32  ;;  %348 = vmatmul.bf16.vlgmr.msra.gmra.mxu3 %v1034_v32 }
  0x39   :  { %694 = vmatpush.bf16.msrb.mxu1 %v1082_v34  ;;  %708 = vmatpush.bf16.msrb.mxu2 %v1090_v37 }
  0x3a   :  { %722 = vmatpush.bf16.msrb.mxu3 %v1098_v38 }
  0x3b   :  { %681 = vmatpush.bf16.msrb.mxu0 %v1073_v35 }
  0x3d   :  { %695 = vmatpush.bf16.msrb.mxu1 %v1081_v36  ;;  %709 = vmatpush.bf16.msrb.mxu2 %v1089_v41 }
  0x3e   :  { %723 = vmatpush.bf16.msrb.mxu3 %v1097_v42 }
  0x3f   :  { %682 = vmatpush.bf16.msrb.mxu0 %v1072_v39 }
  0x41   :  { %696 = vmatpush.bf16.msrb.mxu1 %v1080_v40  ;;  %710 = vmatpush.bf16.msrb.mxu2 %v1088_v45 }
  0x42   :  { %724 = vmatpush.bf16.msrb.mxu3 %v1096_v46 }
  0x43   :  { %683 = vmatpush.bf16.msrb.mxu0 %v1071_v43 }
  0x45   :  { %697 = vmatpush.bf16.msrb.mxu1 %v1079_v44  ;;  %711 = vmatpush.bf16.msrb.mxu2 %v1087_v49 }
  0x46   :  { %725 = vmatpush.bf16.msrb.mxu3 %v1095_v50 }
  0x47   :  { %684 = vmatpush.bf16.msrb.mxu0 %v1070_v47 }
  0x49   :  { %698 = vmatpush.bf16.msrb.mxu1 %v1078_v48  ;;  %712 = vmatpush.bf16.msrb.mxu2 %v1086_v53 }
  0x4a   :  { %726 = vmatpush.bf16.msrb.mxu3 %v1094_v54 }
  0x4b   :  { %685 = vmatpush.bf16.msrb.mxu0 %v1069_v51 }
  0x4d   :  { %699 = vmatpush.bf16.msrb.mxu1 %v1077_v52  ;;  %713 = vmatpush.bf16.msrb.mxu2 %v1085_v58 }
  0x4e   :  { %727 = vmatpush.bf16.msrb.mxu3 %v1093_v59 }
  0x4f   :  { %686 = vmatpush.bf16.msrb.mxu0 %v1068_v56 }
  0x51   :  { %700 = vmatpush.bf16.msrb.mxu1 %v1076_v57  ;;  %714 = vmatpush.bf16.msrb.mxu2 %v1084_v1 }
  0x52   :  { %728 = vmatpush.bf16.msrb.mxu3 %v1092_v2 }
  0x53   :  { %687 = vmatpush.bf16.msrb.mxu0 %v1067_v62 }
  0x55   :  { %701 = vmatpush.bf16.msrb.mxu1 %v1075_v63  ;;  %715 = vmatpush.bf16.msrb.mxu2 %v1083_v6 }
  0x56   :  { %729 = vmatpush.bf16.msrb.mxu3 %v1091_v7 }
  0xb3   :  { %v307_v0 = vpop.f32.mrf.mxu0 }
  0xb4   :  { %v1312_v3 = vadd.f32 %v307_v0, %v124_v60  ;;  %v321_v4 = vpop.f32.mrf.mxu1 }
  0xb5   :  { %v1314_v5 = vadd.f32 %v321_v4, %v125_v61 }
  0xb6   :  { %v354_v8 = vmul.f32 %v1312_v3, %v1312_v3 }
  0xb7   :  { %v355_v9 = vmul.f32 %v1314_v5, %v1314_v5  ;;  %v387_v0 = vmul.f32 0.5, %v1314_v5 }
  0xb8   :  { %v362_v11 = vmul.f32 0.035677407, %v354_v8 }
  0xb9   :  { %v363_v13 = vmul.f32 0.035677407, %v355_v9 }
  0xba   :  { %v370_v15 = vadd.f32 0.7978846, %v362_v11 }
  0xbb   :  { %v335_v14 = vpop.f32.mrf.mxu2  ;;  %v349_v17 = vpop.f32.mrf.mxu3  ;;  %v371_v19 = vadd.f32 0.7978846, %v363_v13 }
  0xbc   :  { %v1322_v16 = vadd.f32 %v335_v14, %v126_v10  ;;  %v309_v18 = vpop.f32.mrf.mxu0  ;;  %v1324_v20 = vadd.f32 %v349_v17, %v127_v12  ;;  %v323_v22 = vpop.f32.mrf.mxu1  ;;  %v378_v27 = vmul.f32 %v370_v15, %v1312_v3 }
  0xbd   :  { %v310_v21 = vadd.f32 %v309_v18, %v124_v60  ;;  %v324_v24 = vadd.f32 %v323_v22, %v125_v61  ;;  %v379_v30 = vmul.f32 %v371_v19, %v1314_v5  ;;  %v386_v60 = vmul.f32 0.5, %v1312_v3 }
  0xbe   :  { %v356_v23 = vmul.f32 %v1322_v16, %v1322_v16  ;;  %v357_v25 = vmul.f32 %v1324_v20, %v1324_v20  ;;  %1111 = vtanh.f32 %v378_v27  ;;  %v388_v3 = vmul.f32 0.5, %v1322_v16 }
  0xbf   :  { %v358_v26 = vmul.f32 %v310_v21, %v310_v21  ;;  %v359_v29 = vmul.f32 %v324_v24, %v324_v24  ;;  %1113 = vtanh.f32 %v379_v30  ;;  %v390_v61 = vmul.f32 0.5, %v310_v21 }
  0xc0   :  { %v364_v28 = vmul.f32 0.035677407, %v356_v23  ;;  %v365_v31 = vmul.f32 0.035677407, %v357_v25  ;;  %v391_v1 = vmul.f32 0.5, %v324_v24  ;;  %v389_v5 = vmul.f32 0.5, %v1324_v20 }
  0xc1   :  { %v366_v32 = vmul.f32 0.035677407, %v358_v26  ;;  %v367_v34 = vmul.f32 0.035677407, %v359_v29 }
  0xc2   :  { %v372_v33 = vadd.f32 0.7978846, %v364_v28  ;;  %v373_v35 = vadd.f32 0.7978846, %v365_v31 }
  0xc3   :  { %v374_v36 = vadd.f32 0.7978846, %v366_v32  ;;  %v337_v37 = vpop.f32.mrf.mxu2  ;;  %v375_v38 = vadd.f32 0.7978846, %v367_v34  ;;  %v351_v40 = vpop.f32.mrf.mxu3 }
  0xc4   :  { %v338_v39 = vadd.f32 %v337_v37, %v126_v10  ;;  %v352_v42 = vadd.f32 %v351_v40, %v127_v12  ;;  %v380_v43 = vmul.f32 %v372_v33, %v1322_v16  ;;  %v381_v46 = vmul.f32 %v373_v35, %v1324_v20  ;;  %v1112_v50 = vpop.eup %1111  ;;  %v1110_v20 = vld [vmem:[%s1348_s4] ss:$0 sm:$0xff]  ;;  %s1264_s4 = smov 128  }
  0xc5   :  { %v382_v41 = vmul.f32 %v374_v36, %v310_v21  ;;  %v383_v44 = vmul.f32 %v375_v38, %v324_v24  ;;  %v1114_v52 = vpop.eup %1113  ;;  %v402_v55 = vadd.f32 1.0, %v1112_v50 }
  0xc6   :  { %v360_v45 = vmul.f32 %v338_v39, %v338_v39  ;;  %v361_v47 = vmul.f32 %v352_v42, %v352_v42  ;;  %v403_v58 = vadd.f32 1.0, %v1114_v52  ;;  %v392_v17 = vmul.f32 0.5, %v338_v39 }
  0xc7   :  { %1115 = vtanh.f32 %v382_v41  ;;  %v410_v6 = vmul.f32 %v402_v55, %v386_v60  ;;  %v393_v19 = vmul.f32 0.5, %v352_v42 }
  0xc8   :  { %v368_v48 = vmul.f32 0.035677407, %v360_v45  ;;  %1117 = vtanh.f32 %v383_v44  ;;  %v369_v49 = vmul.f32 0.035677407, %v361_v47  ;;  %v411_v8 = vmul.f32 %v403_v58, %v387_v0 }
  0xc9   :  { %1119 = vtanh.f32 %v380_v43 }
  0xca   :  { %v376_v51 = vadd.f32 0.7978846, %v368_v48  ;;  %1121 = vtanh.f32 %v381_v46  ;;  %v377_v53 = vadd.f32 0.7978846, %v369_v49 }
  0xcc   :  { %v384_v54 = vmul.f32 %v376_v51, %v338_v39  ;;  %v385_v56 = vmul.f32 %v377_v53, %v352_v42 }
  0xcd   :  { %v1116_v57 = vpop.eup %1115 }
  0xce   :  { %1123 = vtanh.f32 %v384_v54  ;;  %v1118_v59 = vpop.eup %1117  ;;  %v406_v62 = vadd.f32 1.0, %v1116_v57 }
  0xcf   :  { %1125 = vtanh.f32 %v385_v56  ;;  %v1120_v63 = vpop.eup %1119  ;;  %v407_v2 = vadd.f32 1.0, %v1118_v59 }
  0xd0   :  { %v1122_v4 = vpop.eup %1121  ;;  %v414_v7 = vmul.f32 %v406_v62, %v390_v61  ;;  %v404_v10 = vadd.f32 1.0, %v1120_v63 }
  0xd1   :  { %v415_v9 = vmul.f32 %v407_v2, %v391_v1  ;;  %v405_v13 = vadd.f32 1.0, %v1122_v4 }
  0xd2   :  { %v420_v11 = vpack.c.bf16 %v414_v7, %v410_v6  ;;  %v412_v22 = vmul.f32 %v404_v10, %v388_v3 }
  0xd3   :  { %v421_v14 = vpack.c.bf16 %v415_v9, %v411_v8  ;;  %v413_v24 = vmul.f32 %v405_v13, %v389_v5 }
  0xd4   :  { %v1124_v12 = vpop.eup %1123  ;;  %688 = vmatmul.bf16.vlgmr.msrb.gmra.mxu0 %v420_v11 }
  0xd5   :  { %v1126_v15 = vpop.eup %1125  ;;  %v408_v18 = vadd.f32 1.0, %v1124_v12  ;;  %702 = vmatmul.bf16.vlgmr.msrb.gmra.mxu1 %v421_v14 }
  0xd6   :  { %v409_v21 = vadd.f32 1.0, %v1126_v15 }
  0xd7   :  { %v416_v23 = vmul.f32 %v408_v18, %v392_v17 }
  0xd8   :  { %v417_v25 = vmul.f32 %v409_v21, %v393_v19 }
  0xd9   :  { %v422_v26 = vpack.c.bf16 %v416_v23, %v412_v22 }
  0xda   :  { %v423_v27 = vpack.c.bf16 %v417_v25, %v413_v24 }
  0xdb   :  { %716 = vmatmul.bf16.vlgmr.msrb.gmra.mxu2 %v422_v26 }
  0xdc   :  { %730 = vmatmul.bf16.vlgmr.msrb.gmra.mxu3 %v423_v27 }
 0x151   :  { %v689_v28 = vpop.f32.mrf.mxu0 }
 0x152   :  { %v703_v29 = vpop.f32.mrf.mxu1 }
 0x153   :  { %v704_v30 = vadd.f32 %v703_v29, %v689_v28 }
 0x159   :  { %v691_v34 = vpop.f32.mrf.mxu0 }
 0x15a   :  { %v705_v35 = vpop.f32.mrf.mxu1 }
 0x15b   :  { %v706_v37 = vadd.f32 %v705_v35, %v691_v34 }
 0x15e   :  { %v717_v16 = vpop.f32.mrf.mxu2 }
 0x15f   :  { %v718_v31 = vadd.f32 %v717_v16, %v704_v30  ;;  %v731_v32 = vpop.f32.mrf.mxu3 }
 0x161   :  { %v732_v33 = vadd.f32 %v731_v32, %v718_v31 }
 0x163   :  { %v749_v36 = vadd.f32 %v1110_v20, %v732_v33 }
 0x165   :  { %751 = vst [vmem:[#allocation11] sm:$0xff] %v749_v36 }
 0x166   :  { %v719_v38 = vpop.f32.mrf.mxu2 }
 0x167   :  { %v720_v39 = vadd.f32 %v719_v38, %v706_v37  ;;  %v733_v40 = vpop.f32.mrf.mxu3 }
 0x169   :  { %v734_v41 = vadd.f32 %v733_v40, %v720_v39 }
 0x16b   :  { %v750_v42 = vadd.f32 %v1110_v20, %v734_v41 }
 0x16d   :  { %752 = vst [vmem:[#allocation11 + $0x8] sm:$0xff] %v750_v42 }
 0x16e   :  { %765 = dma.vmem_to_hbm [thread:$0]  %s758_s16, 256, %s760_s19, [#allocation5], %s1264_s4, %s1264_s4, %s1265_s20  }
 0x16f   :  { %1253 = dma.done.wait [#allocation5], 256  }
 0x170   :  { %1254 = vsyncadd [#allocation5], 4294967040 }
 0x171   :  { %770 = vsyncpa [#allocation4], 1 }
 0x172   :  { %771 = vsyncpa [#allocation7], 1 }
 0x173   :  { %772 = vsyncpa [#allocation10], 1 }
 0x174   :  { %773 = vsyncpa [#allocation5], 1 }

</bundles_post_ra>
